<compile_context>
chip_gen: v7x
topology: tpu7x:2x2x1
jax: 0.10.0
libtpu: 0.0.40
codegen_flags: <defaults>
</compile_context>

<pallas_src>
import jax
import jax.numpy as jnp
import numpy as np
from jax.experimental import pallas as pl
from jax.experimental.pallas import tpu as pltpu

_PREC = jax.lax.Precision.HIGHEST  # pin true-f32 matmul accumulation


def _round_up(x, m):
    return ((x + m - 1) // m) * m


def point_nelf_kernel(pts_ref, ro_ref, rd_ref, emb_ref,
                      w1p_ref, w1a_ref, b1_ref,
                      w2_ref, b2_ref,
                      w3_ref, b3_ref,
                      out_ref, acc_ref):
    k = pl.program_id(1)

    # ---- init accumulator for this B tile --------------------------------
    @pl.when(k == 0)
    def _():
        acc_ref[...] = jnp.zeros_like(acc_ref)

    # ---- elementwise weight computation (VPU / EUP) -----------------------
    # point components, each (1, Nt) — points live on the lane axis
    px = pts_ref[0:1, :]
    py = pts_ref[1:2, :]
    pz = pts_ref[2:3, :]
    # ray origin / direction components, each (Bt, 1)
    ox = ro_ref[:, 0:1]; oy = ro_ref[:, 1:2]; oz = ro_ref[:, 2:3]
    dx = rd_ref[:, 0:1]; dy = rd_ref[:, 1:2]; dz = rd_ref[:, 2:3]
    # per-ray scalars (Bt, 1) — do not scale with N
    dx2 = dx * dx; dy2 = dy * dy; dz2 = dz * dz
    dd = dx2 + dy2 + dz2                               # ||d||^2

    # v = points[None] - ray_origin[:, None]  -> per-component (Bt, Nt)
    vx = px - ox
    vy = py - oy
    vz = pz - oz
    vx2 = vx * vx; vy2 = vy * vy; vz2 = vz * vz
    vv = vx2 + vy2 + vz2                               # ||v||^2
    vd = vx * dx + vy * dy + vz * dz                   # v . d

    # Lagrange identity (exact): ||v x d||^2 = ||v||^2 ||d||^2 - (v.d)^2
    cross_sq = vv * dd - vd * vd
    # ||v * d||^2 (elementwise product, squared 2-norm), reusing the squares
    align_sq = vx2 * dx2 + vy2 * dy2 + vz2 * dz2

    # stack perpendicular / alignment weights along the sublane axis -> (2Bt, Nt)
    w = jnp.exp(-jnp.concatenate([cross_sq, align_sq], axis=0))

    # ---- single MXU reduction matmul, accumulated across N tiles ----------
    acc_ref[...] += jnp.dot(w, emb_ref[...],
                            precision=_PREC,
                            preferred_element_type=jnp.float32)   # (2Bt, E)

    # ---- MLP + store only once per B tile (last N step) -------------------
    @pl.when(k == pl.num_programs(1) - 1)
    def _():
        bt = out_ref.shape[0]
        s_perp = acc_ref[0:bt, :]
        s_align = acc_ref[bt:2 * bt, :]
        # cat([s_perp, s_align]) @ W1 == s_perp @ W1p + s_align @ W1a
        h = (jnp.dot(s_perp, w1p_ref[...], precision=_PREC,
                     preferred_element_type=jnp.float32)
             + jnp.dot(s_align, w1a_ref[...], precision=_PREC,
                       preferred_element_type=jnp.float32)
             + b1_ref[...])
        h = jnp.maximum(h, 0.0)
        h = jnp.dot(h, w2_ref[...], precision=_PREC,
                    preferred_element_type=jnp.float32) + b2_ref[...]
        h = jnp.maximum(h, 0.0)
        out_ref[...] = (jnp.dot(h, w3_ref[...], precision=_PREC,
                                preferred_element_type=jnp.float32)
                        + b3_ref[...])


def point_based_nelf_forward(ray_origin, ray_dir_world, points, emb, params,
                             *, tile_b=128, tile_n=1024):
    """Pads/reshapes inputs, builds the grid and invokes the Pallas kernel."""
    W1, b1, W2, b2, W3, b3 = params
    N, E = emb.shape
    B = ray_origin.shape[0]
    H0 = W1.shape[1]
    H1 = W2.shape[1]
    out_dim = W3.shape[1]

    # Tile sizes: sublane multiple of 8 for B, lane multiple of 128 for N.
    tile_b = _round_up(min(tile_b, _round_up(B, 8)), 8)
    tile_n = _round_up(min(tile_n, _round_up(N, 128)), 128)
    Bp = _round_up(B, tile_b)
    Np = _round_up(N, tile_n)

    # Zero padding: padded embedding rows are zero -> padded points contribute
    # nothing to the accumulated sums; padded ray rows are sliced off below.
    pts_t = jnp.zeros((3, Np), points.dtype).at[:, :N].set(points.T)
    emb_p = jnp.zeros((Np, E), emb.dtype).at[:N, :].set(emb)
    ro_p = jnp.zeros((Bp, 3), ray_origin.dtype).at[:B, :].set(ray_origin)
    rd_p = jnp.zeros((Bp, 3), ray_dir_world.dtype).at[:B, :].set(ray_dir_world)

    W1p = W1[:E, :]   # perpendicular half of the first layer
    W1a = W1[E:, :]   # alignment half of the first layer

    grid = (Bp // tile_b, Np // tile_n)
    const = lambda i, k: (0, 0)

    weight_elems = (W1.size + W2.size + W3.size + H0 + H1 + out_dim)
    cost = pl.CostEstimate(
        flops=(2 * (2 * Bp) * Np * E                      # reduction matmul
               + 25 * Bp * Np                             # elementwise weights
               + 2 * Bp * (2 * E * H0 + H0 * H1 + H1 * out_dim)),
        transcendentals=2 * Bp * Np,
        bytes_accessed=4 * (3 * Np + Np * E + 6 * Bp + Bp * out_dim
                            + weight_elems),
    )

    out = pl.pallas_call(
        point_nelf_kernel,
        out_shape=jax.ShapeDtypeStruct((Bp, out_dim), jnp.float32),
        grid_spec=pltpu.PrefetchScalarGridSpec(
            num_scalar_prefetch=0,
            grid=grid,
            in_specs=[
                pl.BlockSpec((3, tile_n), lambda i, k: (0, k)),        # points (3, N)
                pl.BlockSpec((tile_b, 3), lambda i, k: (i, 0)),        # ray_origin
                pl.BlockSpec((tile_b, 3), lambda i, k: (i, 0)),        # ray_dir
                pl.BlockSpec((tile_n, E), lambda i, k: (k, 0)),        # embeddings
                pl.BlockSpec((E, H0), const),                          # W1 (perp half)
                pl.BlockSpec((E, H0), const),                          # W1 (align half)
                pl.BlockSpec((1, H0), const),                          # b1
                pl.BlockSpec((H0, H1), const),                         # W2
                pl.BlockSpec((1, H1), const),                          # b2
                pl.BlockSpec((H1, out_dim), const),                    # W3
                pl.BlockSpec((1, out_dim), const),                     # b3
            ],
            out_specs=pl.BlockSpec((tile_b, out_dim), lambda i, k: (i, 0)),
            scratch_shapes=[pltpu.VMEM((2 * tile_b, E), jnp.float32)],
        ),
        compiler_params=pltpu.CompilerParams(
            dimension_semantics=("parallel", "arbitrary"),
        ),
        cost_estimate=cost,
    )(pts_t, ro_p, rd_p, emb_p,
      W1p, W1a, b1.reshape(1, -1),
      W2, b2.reshape(1, -1),
      W3, b3.reshape(1, -1))

    return out[:B]


def reference_forward(ray_origin, ray_dir_world, points, emb, params):
    """Pure-JAX reference mirroring the PyTorch forward exactly."""
    with jax.default_matmul_precision('highest'):
        v = points[None, :, :] - ray_origin[:, None, :]                  # (B, N, 3)
        c = jnp.cross(v, ray_dir_world[:, None, :], axis=-1)
        len_perp = jnp.linalg.norm(c, axis=-1)                           # (B, N)
        ray_alignment = jnp.linalg.norm(v * ray_dir_world[:, None, :], axis=-1)
        w_perp = jnp.exp(-len_perp ** 2)
        w_align = jnp.exp(-ray_alignment ** 2)
        s_perp = jnp.einsum('bn,ne->bne', w_perp, emb).sum(axis=1)       # == w_perp @ emb
        s_align = jnp.einsum('bn,ne->bne', w_align, emb).sum(axis=1)
        s = jnp.concatenate([s_perp, s_align], axis=-1)                  # (B, 2E)
        W1, b1, W2, b2, W3, b3 = params
        h = jnp.maximum(s @ W1 + b1, 0.0)
        h = jnp.maximum(h @ W2 + b2, 0.0)
        return h @ W3 + b3


if __name__ == "__main__":
    # Small, deterministic problem sizes (N deliberately NOT a multiple of the
    # N tile to exercise the zero-padding path; B spans two B tiles).
    B = 16      # ray batch
    N = 500     # number of points
    E = 16      # point_embedding_size
    H0, H1 = 32, 32   # hidden_dims = [32, 32]
    OUT = 4

    key = jax.random.PRNGKey(0)
    ks = jax.random.split(key, 10)

    points = jax.random.normal(ks[0], (N, 3), dtype=jnp.float32)          # initial_point
    emb = jax.random.normal(ks[1], (N, E), dtype=jnp.float32)             # point_embedding_parameters
    ray_origin = jax.random.normal(ks[2], (B, 3), dtype=jnp.float32)
    ray_dir = jax.random.normal(ks[3], (B, 3), dtype=jnp.float32)
    ray_dir = ray_dir / jnp.linalg.norm(ray_dir, axis=-1, keepdims=True)
    extra = jax.random.normal(ks[4], (B, 3), dtype=jnp.float32)           # third tuple element (unused)

    # Deterministic MLP parameters (DeepNeuralNetwork(2E, [H0, H1], 4))
    W1 = 0.1 * jax.random.normal(ks[5], (2 * E, H0), dtype=jnp.float32)
    b1 = 0.1 * jax.random.normal(ks[6], (H0,), dtype=jnp.float32)
    W2 = 0.1 * jax.random.normal(ks[7], (H0, H1), dtype=jnp.float32)
    b2 = 0.1 * jax.random.normal(ks[8], (H1,), dtype=jnp.float32)
    W3 = 0.1 * jax.random.normal(ks[9], (H1, OUT), dtype=jnp.float32)
    b3 = jnp.zeros((OUT,), dtype=jnp.float32)
    params = (W1, b1, W2, b2, W3, b3)

    # forward((ray_origin, ray_dir_world, _)); tiles chosen so grid = (2, 4).
    out = point_based_nelf_forward(ray_origin, ray_dir, points, emb, params,
                                   tile_b=8, tile_n=128)
    out = jax.block_until_ready(out)

    ref = reference_forward(ray_origin, ray_dir, points, emb, params)
    # Tolerance accounts for tiled N accumulation order + the (exact-math)
    # Lagrange-identity rewrite of the cross-product norm.
    np.testing.assert_allclose(np.asarray(out), np.asarray(ref), rtol=1e-4, atol=1e-4)
    assert out.shape == (B, OUT)
    print("KERNEL_OK")
</pallas_src>

<mosaic_0001>
module attributes {stable_mosaic.version = 11 : i64} {
  func.func @point_nelf_kernel(%arg0: i32, %arg1: i32, %arg2: memref<3x128xf32, #tpu.memory_space<vmem>>, %arg3: memref<8x3xf32, #tpu.memory_space<vmem>>, %arg4: memref<8x3xf32, #tpu.memory_space<vmem>>, %arg5: memref<128x16xf32, #tpu.memory_space<vmem>>, %arg6: memref<16x32xf32, #tpu.memory_space<vmem>>, %arg7: memref<16x32xf32, #tpu.memory_space<vmem>>, %arg8: memref<1x32xf32, #tpu.memory_space<vmem>>, %arg9: memref<32x32xf32, #tpu.memory_space<vmem>>, %arg10: memref<1x32xf32, #tpu.memory_space<vmem>>, %arg11: memref<32x4xf32, #tpu.memory_space<vmem>>, %arg12: memref<1x4xf32, #tpu.memory_space<vmem>>, %arg13: memref<8x4xf32, #tpu.memory_space<vmem>>, %arg14: memref<16x16xf32, #tpu.memory_space<vmem>>) attributes {dimension_semantics = [#tpu.dimension_semantics<parallel>, #tpu.dimension_semantics<arbitrary>], iteration_bounds = array<i64: 2, 4>, scalar_prefetch = 0 : i64, scratch_operands = 1 : i64, tpu.core_type = #tpu.core_type<tc>, window_params = [{transform_indices = @transform_0, window_bounds = array<i64: 3, 128>}, {transform_indices = @transform_1, window_bounds = array<i64: 8, 3>}, {transform_indices = @transform_2, window_bounds = array<i64: 8, 3>}, {transform_indices = @transform_3, window_bounds = array<i64: 128, 16>}, {pipeline_mode = #tpu.pipeline_mode<synchronous>, transform_indices = @transform_4, window_bounds = array<i64: 16, 32>}, {pipeline_mode = #tpu.pipeline_mode<synchronous>, transform_indices = @transform_5, window_bounds = array<i64: 16, 32>}, {pipeline_mode = #tpu.pipeline_mode<synchronous>, transform_indices = @transform_6, window_bounds = array<i64: 1, 32>}, {pipeline_mode = #tpu.pipeline_mode<synchronous>, transform_indices = @transform_7, window_bounds = array<i64: 32, 32>}, {pipeline_mode = #tpu.pipeline_mode<synchronous>, transform_indices = @transform_8, window_bounds = array<i64: 1, 32>}, {pipeline_mode = #tpu.pipeline_mode<synchronous>, transform_indices = @transform_9, window_bounds = array<i64: 32, 4>}, {pipeline_mode = #tpu.pipeline_mode<synchronous>, transform_indices = @transform_10, window_bounds = array<i64: 1, 4>}, {transform_indices = @transform_11, window_bounds = array<i64: 8, 4>}]} {
    %c0_i32 = arith.constant 0 : i32
    %0 = arith.cmpi eq, %arg1, %c0_i32 : i32
    %1 = arith.extui %0 : i1 to i32
    %c0_i32_0 = arith.constant 0 : i32
    %2 = arith.cmpi ne, %1, %c0_i32_0 : i32
    scf.if %2 {
      %cst_24 = arith.constant 0.000000e+00 : f32
      %63 = vector.broadcast %cst_24 : f32 to vector<16x16xf32>
      %c0_25 = arith.constant 0 : index
      %c0_26 = arith.constant 0 : index
      %64 = vector.load %arg14[%c0_25, %c0_26] : memref<16x16xf32, #tpu.memory_space<vmem>>, vector<16x16xf32>
      tpu.vector_store %arg14[%c0_25, %c0_26], %63 {strides = array<i32>} : memref<16x16xf32, #tpu.memory_space<vmem>>, vector<16x16xf32>,
    } else {
    }
    %c0 = arith.constant 0 : index
    %c0_1 = arith.constant 0 : index
    %3 = vector.load %arg2[%c0, %c0_1] : memref<3x128xf32, #tpu.memory_space<vmem>>, vector<1x128xf32>
    %c1 = arith.constant 1 : index
    %c0_2 = arith.constant 0 : index
    %4 = vector.load %arg2[%c1, %c0_2] : memref<3x128xf32, #tpu.memory_space<vmem>>, vector<1x128xf32>
    %c2 = arith.constant 2 : index
    %c0_3 = arith.constant 0 : index
    %5 = vector.load %arg2[%c2, %c0_3] : memref<3x128xf32, #tpu.memory_space<vmem>>, vector<1x128xf32>
    %c0_4 = arith.constant 0 : index
    %c0_5 = arith.constant 0 : index
    %6 = vector.load %arg3[%c0_4, %c0_5] : memref<8x3xf32, #tpu.memory_space<vmem>>, vector<8x1xf32>
    %c0_6 = arith.constant 0 : index
    %c1_7 = arith.constant 1 : index
    %7 = vector.load %arg3[%c0_6, %c1_7] : memref<8x3xf32, #tpu.memory_space<vmem>>, vector<8x1xf32>
    %c0_8 = arith.constant 0 : index
    %c2_9 = arith.constant 2 : index
    %8 = vector.load %arg3[%c0_8, %c2_9] : memref<8x3xf32, #tpu.memory_space<vmem>>, vector<8x1xf32>
    %c0_10 = arith.constant 0 : index
    %c0_11 = arith.constant 0 : index
    %9 = vector.load %arg4[%c0_10, %c0_11] : memref<8x3xf32, #tpu.memory_space<vmem>>, vector<8x1xf32>
    %c0_12 = arith.constant 0 : index
    %c1_13 = arith.constant 1 : index
    %10 = vector.load %arg4[%c0_12, %c1_13] : memref<8x3xf32, #tpu.memory_space<vmem>>, vector<8x1xf32>
    %c0_14 = arith.constant 0 : index
    %c2_15 = arith.constant 2 : index
    %11 = vector.load %arg4[%c0_14, %c2_15] : memref<8x3xf32, #tpu.memory_space<vmem>>, vector<8x1xf32>
    %12 = arith.mulf %9, %9 : vector<8x1xf32>
    %13 = arith.mulf %10, %10 : vector<8x1xf32>
    %14 = arith.mulf %11, %11 : vector<8x1xf32>
    %15 = arith.addf %12, %13 : vector<8x1xf32>
    %16 = arith.addf %15, %14 : vector<8x1xf32>
    %17 = vector.broadcast %3 : vector<1x128xf32> to vector<8x128xf32>
    %18 = vector.broadcast %6 : vector<8x1xf32> to vector<8x128xf32>
    %19 = arith.subf %17, %18 : vector<8x128xf32>
    %20 = vector.broadcast %4 : vector<1x128xf32> to vector<8x128xf32>
    %21 = vector.broadcast %7 : vector<8x1xf32> to vector<8x128xf32>
    %22 = arith.subf %20, %21 : vector<8x128xf32>
    %23 = vector.broadcast %5 : vector<1x128xf32> to vector<8x128xf32>
    %24 = vector.broadcast %8 : vector<8x1xf32> to vector<8x128xf32>
    %25 = arith.subf %23, %24 : vector<8x128xf32>
    %26 = arith.mulf %19, %19 : vector<8x128xf32>
    %27 = arith.mulf %22, %22 : vector<8x128xf32>
    %28 = arith.mulf %25, %25 : vector<8x128xf32>
    %29 = arith.addf %26, %27 : vector<8x128xf32>
    %30 = arith.addf %29, %28 : vector<8x128xf32>
    %31 = vector.broadcast %9 : vector<8x1xf32> to vector<8x128xf32>
    %32 = arith.mulf %19, %31 : vector<8x128xf32>
    %33 = vector.broadcast %10 : vector<8x1xf32> to vector<8x128xf32>
    %34 = arith.mulf %22, %33 : vector<8x128xf32>
    %35 = arith.addf %32, %34 : vector<8x128xf32>
    %36 = vector.broadcast %11 : vector<8x1xf32> to vector<8x128xf32>
    %37 = arith.mulf %25, %36 : vector<8x128xf32>
    %38 = arith.addf %35, %37 : vector<8x128xf32>
    %39 = vector.broadcast %16 : vector<8x1xf32> to vector<8x128xf32>
    %40 = arith.mulf %30, %39 : vector<8x128xf32>
    %41 = arith.mulf %38, %38 : vector<8x128xf32>
    %42 = arith.subf %40, %41 : vector<8x128xf32>
    %43 = vector.broadcast %12 : vector<8x1xf32> to vector<8x128xf32>
    %44 = arith.mulf %26, %43 : vector<8x128xf32>
    %45 = vector.broadcast %13 : vector<8x1xf32> to vector<8x128xf32>
    %46 = arith.mulf %27, %45 : vector<8x128xf32>
    %47 = arith.addf %44, %46 : vector<8x128xf32>
    %48 = vector.broadcast %14 : vector<8x1xf32> to vector<8x128xf32>
    %49 = arith.mulf %28, %48 : vector<8x128xf32>
    %50 = arith.addf %47, %49 : vector<8x128xf32>
    %51 = tpu.concatenate %42, %50 in 0 : vector<8x128xf32>, vector<8x128xf32> -> vector<16x128xf32>
    %cst = arith.constant 0.000000e+00 : f32
    %52 = vector.broadcast %cst : f32 to vector<16x128xf32>
    %53 = arith.subf %52, %51 : vector<16x128xf32>
    %54 = math.exp %53 : vector<16x128xf32>
    %c0_16 = arith.constant 0 : index
    %c0_17 = arith.constant 0 : index
    %55 = vector.load %arg14[%c0_16, %c0_17] : memref<16x16xf32, #tpu.memory_space<vmem>>, vector<16x16xf32>
    %c0_18 = arith.constant 0 : index
    %c0_19 = arith.constant 0 : index
    %56 = vector.load %arg5[%c0_18, %c0_19] : memref<128x16xf32, #tpu.memory_space<vmem>>, vector<128x16xf32>
    %cst_20 = arith.constant dense<0.000000e+00> : vector<16x16xf32>
    %57 = tpu.matmul %54, %56, %cst_20 {dimension_numbers = #tpu.dot_dimension_numbers<[1], [0], [0], [1], [0, 0, 1, 1], [], []>, precision = #tpu.contract_precision<fp32>} : vector<16x128xf32>, vector<128x16xf32>, vector<16x16xf32> -> vector<16x16xf32>
    %58 = arith.addf %55, %57 : vector<16x16xf32>
    %c0_21 = arith.constant 0 : index
    %c0_22 = arith.constant 0 : index
    %59 = vector.load %arg14[%c0_21, %c0_22] : memref<16x16xf32, #tpu.memory_space<vmem>>, vector<16x16xf32>
    tpu.vector_store %arg14[%c0_21, %c0_22], %58 {strides = array<i32>} : memref<16x16xf32, #tpu.memory_space<vmem>>, vector<16x16xf32>,
    %c3_i32 = arith.constant 3 : i32
    %60 = arith.cmpi eq, %arg1, %c3_i32 : i32
    %61 = arith.extui %60 : i1 to i32
    %c0_i32_23 = arith.constant 0 : i32
    %62 = arith.cmpi ne, %61, %c0_i32_23 : i32
    scf.if %62 {
      %c0_24 = arith.constant 0 : index
      %c0_25 = arith.constant 0 : index
      %63 = vector.load %arg14[%c0_24, %c0_25] : memref<16x16xf32, #tpu.memory_space<vmem>>, vector<8x16xf32>
      %c8 = arith.constant 8 : index
      %c0_26 = arith.constant 0 : index
      %64 = vector.load %arg14[%c8, %c0_26] : memref<16x16xf32, #tpu.memory_space<vmem>>, vector<8x16xf32>
      %c0_27 = arith.constant 0 : index
      %c0_28 = arith.constant 0 : index
      %65 = vector.load %arg6[%c0_27, %c0_28] : memref<16x32xf32, #tpu.memory_space<vmem>>, vector<16x32xf32>
      %cst_29 = arith.constant dense<0.000000e+00> : vector<8x32xf32>
      %66 = tpu.matmul %63, %65, %cst_29 {dimension_numbers = #tpu.dot_dimension_numbers<[1], [0], [0], [1], [0, 0, 1, 1], [], []>, precision = #tpu.contract_precision<fp32>} : vector<8x16xf32>, vector<16x32xf32>, vector<8x32xf32> -> vector<8x32xf32>
      %c0_30 = arith.constant 0 : index
      %c0_31 = arith.constant 0 : index
      %67 = vector.load %arg7[%c0_30, %c0_31] : memref<16x32xf32, #tpu.memory_space<vmem>>, vector<16x32xf32>
      %cst_32 = arith.constant dense<0.000000e+00> : vector<8x32xf32>
      %68 = tpu.matmul %64, %67, %cst_32 {dimension_numbers = #tpu.dot_dimension_numbers<[1], [0], [0], [1], [0, 0, 1, 1], [], []>, precision = #tpu.contract_precision<fp32>} : vector<8x16xf32>, vector<16x32xf32>, vector<8x32xf32> -> vector<8x32xf32>
      %69 = arith.addf %66, %68 : vector<8x32xf32>
      %c0_33 = arith.constant 0 : index
      %c0_34 = arith.constant 0 : index
      %70 = vector.load %arg8[%c0_33, %c0_34] : memref<1x32xf32, #tpu.memory_space<vmem>>, vector<1x32xf32>
      %71 = vector.broadcast %70 : vector<1x32xf32> to vector<8x32xf32>
      %72 = arith.addf %69, %71 : vector<8x32xf32>
      %cst_35 = arith.constant 0.000000e+00 : f32
      %73 = vector.broadcast %cst_35 : f32 to vector<8x32xf32>
      %74 = arith.maximumf %72, %73 : vector<8x32xf32>
      %c0_36 = arith.constant 0 : index
      %c0_37 = arith.constant 0 : index
      %75 = vector.load %arg9[%c0_36, %c0_37] : memref<32x32xf32, #tpu.memory_space<vmem>>, vector<32x32xf32>
      %cst_38 = arith.constant dense<0.000000e+00> : vector<8x32xf32>
      %76 = tpu.matmul %74, %75, %cst_38 {dimension_numbers = #tpu.dot_dimension_numbers<[1], [0], [0], [1], [0, 0, 1, 1], [], []>, precision = #tpu.contract_precision<fp32>} : vector<8x32xf32>, vector<32x32xf32>, vector<8x32xf32> -> vector<8x32xf32>
      %c0_39 = arith.constant 0 : index
      %c0_40 = arith.constant 0 : index
      %77 = vector.load %arg10[%c0_39, %c0_40] : memref<1x32xf32, #tpu.memory_space<vmem>>, vector<1x32xf32>
      %78 = vector.broadcast %77 : vector<1x32xf32> to vector<8x32xf32>
      %79 = arith.addf %76, %78 : vector<8x32xf32>
      %cst_41 = arith.constant 0.000000e+00 : f32
      %80 = vector.broadcast %cst_41 : f32 to vector<8x32xf32>
      %81 = arith.maximumf %79, %80 : vector<8x32xf32>
      %c0_42 = arith.constant 0 : index
      %c0_43 = arith.constant 0 : index
      %82 = vector.load %arg11[%c0_42, %c0_43] : memref<32x4xf32, #tpu.memory_space<vmem>>, vector<32x4xf32>
      %cst_44 = arith.constant dense<0.000000e+00> : vector<8x4xf32>
      %83 = tpu.matmul %81, %82, %cst_44 {dimension_numbers = #tpu.dot_dimension_numbers<[1], [0], [0], [1], [0, 0, 1, 1], [], []>, precision = #tpu.contract_precision<fp32>} : vector<8x32xf32>, vector<32x4xf32>, vector<8x4xf32> -> vector<8x4xf32>
      %c0_45 = arith.constant 0 : index
      %c0_46 = arith.constant 0 : index
      %84 = vector.load %arg12[%c0_45, %c0_46] : memref<1x4xf32, #tpu.memory_space<vmem>>, vector<1x4xf32>
      %85 = vector.broadcast %84 : vector<1x4xf32> to vector<8x4xf32>
      %86 = arith.addf %83, %85 : vector<8x4xf32>
      %c0_47 = arith.constant 0 : index
      %c0_48 = arith.constant 0 : index
      %87 = vector.load %arg13[%c0_47, %c0_48] : memref<8x4xf32, #tpu.memory_space<vmem>>, vector<8x4xf32>
      tpu.vector_store %arg13[%c0_47, %c0_48], %86 {strides = array<i32>} : memref<8x4xf32, #tpu.memory_space<vmem>>, vector<8x4xf32>,
    } else {
    }
    return
  }
  func.func @transform_0(%arg0: i32, %arg1: i32) -> (i32, i32) {
    %c0_i32 = arith.constant 0 : i32
    %c0_i32_0 = arith.constant 0 : i32
    return %c0_i32, %arg1 : i32, i32
  }
  func.func @transform_1(%arg0: i32, %arg1: i32) -> (i32, i32) {
    %c0_i32 = arith.constant 0 : i32
    %c0_i32_0 = arith.constant 0 : i32
    return %arg0, %c0_i32 : i32, i32
  }
  func.func @transform_2(%arg0: i32, %arg1: i32) -> (i32, i32) {
    %c0_i32 = arith.constant 0 : i32
    %c0_i32_0 = arith.constant 0 : i32
    return %arg0, %c0_i32 : i32, i32
  }
  func.func @transform_3(%arg0: i32, %arg1: i32) -> (i32, i32) {
    %c0_i32 = arith.constant 0 : i32
    %c0_i32_0 = arith.constant 0 : i32
    return %arg1, %c0_i32 : i32, i32
  }
  func.func @transform_4(%arg0: i32, %arg1: i32) -> (i32, i32) {
    %c0_i32 = arith.constant 0 : i32
    %c0_i32_0 = arith.constant 0 : i32
    %c0_i32_1 = arith.constant 0 : i32
    return %c0_i32, %c0_i32_0 : i32, i32
  }
  func.func @transform_5(%arg0: i32, %arg1: i32) -> (i32, i32) {
    %c0_i32 = arith.constant 0 : i32
    %c0_i32_0 = arith.constant 0 : i32
    %c0_i32_1 = arith.constant 0 : i32
    return %c0_i32, %c0_i32_0 : i32, i32
  }
  func.func @transform_6(%arg0: i32, %arg1: i32) -> (i32, i32) {
    %c0_i32 = arith.constant 0 : i32
    %c0_i32_0 = arith.constant 0 : i32
    %c0_i32_1 = arith.constant 0 : i32
    return %c0_i32, %c0_i32_0 : i32, i32
  }
  func.func @transform_7(%arg0: i32, %arg1: i32) -> (i32, i32) {
    %c0_i32 = arith.constant 0 : i32
    %c0_i32_0 = arith.constant 0 : i32
    %c0_i32_1 = arith.constant 0 : i32
    return %c0_i32, %c0_i32_0 : i32, i32
  }
  func.func @transform_8(%arg0: i32, %arg1: i32) -> (i32, i32) {
    %c0_i32 = arith.constant 0 : i32
    %c0_i32_0 = arith.constant 0 : i32
    %c0_i32_1 = arith.constant 0 : i32
    return %c0_i32, %c0_i32_0 : i32, i32
  }
  func.func @transform_9(%arg0: i32, %arg1: i32) -> (i32, i32) {
    %c0_i32 = arith.constant 0 : i32
    %c0_i32_0 = arith.constant 0 : i32
    %c0_i32_1 = arith.constant 0 : i32
    return %c0_i32, %c0_i32_0 : i32, i32
  }
  func.func @transform_10(%arg0: i32, %arg1: i32) -> (i32, i32) {
    %c0_i32 = arith.constant 0 : i32
    %c0_i32_0 = arith.constant 0 : i32
    %c0_i32_1 = arith.constant 0 : i32
    return %c0_i32, %c0_i32_0 : i32, i32
  }
  func.func @transform_11(%arg0: i32, %arg1: i32) -> (i32, i32) {
    %c0_i32 = arith.constant 0 : i32
    %c0_i32_0 = arith.constant 0 : i32
    return %arg0, %c0_i32 : i32, i32
  }
}

</mosaic_0001>

<bundles_post_ra>
// kernel: tpu_custom_call.1
= control target key start
LH: loop header
LB: loop body
LE: loop exit
PB: predicated region body
PF: predicated region fallthrough
CT: control target
= control target key end

     0   :  { %s4460_s17 = smov 0   ;;  %s4462_s18 = smov 0   ;;  %s5071_s0 = inlined_call_operand.vmem [shape: f32[3,512], index: 0, kind: input, shape index: {}]   ;;  %s5072_s1 = inlined_call_operand.vmem [shape: f32[16,3], index: 1, kind: input, shape index: {}]   ;;  %s5073_s2 = inlined_call_operand.vmem [shape: f32[16,3], index: 2, kind: input, shape index: {}]   ;;  %s5074_s3 = inlined_call_operand.vmem [shape: f32[512,16], index: 3, kind: input, shape index: {}]   ;;  %s5075_s4 = inlined_call_operand.vmem [shape: f32[16,32], index: 4, kind: input, shape index: {}]   ;;  %s5076_s5 = inlined_call_operand.vmem [shape: f32[16,32], index: 5, kind: input, shape index: {}]   ;;  %s5077_s6 = inlined_call_operand.vmem [shape: f32[1,32], index: 6, kind: input, shape index: {}]   ;;  %s5078_s7 = inlined_call_operand.vmem [shape: f32[32,32], index: 7, kind: input, shape index: {}]   ;;  %s5079_s8 = inlined_call_operand.vmem [shape: f32[1,32], index: 8, kind: input, shape index: {}]   ;;  %s5080_s9 = inlined_call_operand.vmem [shape: f32[32,4], index: 9, kind: input, shape index: {}]   ;;  %s5081_s10 = inlined_call_operand.vmem [shape: f32[1,4], index: 10, kind: input, shape index: {}]   ;;  %s5082_s11 = inlined_call_operand.vmem [shape: f32[16,4], index: 11, kind: output, shape index: {}]  }
   0x1   :  { %5083 = sst [smem:[#allocation5_spill]] %s5071_s0  ;;  %s4464_s19 = smov 0  }
   0x2   :  { %s4466_s20 = smov 0   ;;  %s4468_s21 = smov 0  }
   0x3 LB: > { %s30_s22 = sadd.s32 1, %s4381_s19  ;;  %s33_s23 = sadd.s32 1, %s4385_s20  ;;  %s4389_s21 = sphi %s4468_s21, %s21_s21   ;;  %s4385_s20 = sphi %s4466_s20, %s5092_s20   ;;  %s4381_s19 = sphi %s4464_s19, %s5091_s19   ;;  %s4377_s18 = sphi %s4462_s18, %s5090_s18   ;;  %s4373_s17 = sphi %s4460_s17, %s5089_s17  }
   0x4   : > { %p31_p0 = scmp.ge.s32.totalorder %s30_s22, 4  ;;  %p3310_p1 = scmp.ge.s32.totalorder %s4389_s21, 1 }
   0x5   : > { %p377_p2 = scmp.lt.s32.totalorder %s4389_s21, 9 }
   0x6   : > { %s5094_s22 = smov (%p31_p0, %s30_s22), 0  ;;  %s5096_s23 = smov (!%p31_p0, %s33_s23), %s4385_s20 }
   0x7   : > { %5084 = sst [smem:[#allocation3_spill]] %s5094_s22  ;;  %p378_p3 = pnand %p3310_p1, %p377_p2 }
   0x8   : > { %p35_p4 = scmp.ge.s32.totalorder %s5096_s23, 2  ;;  %p428_p5 = scmp.lt.s32.totalorder (!%p378_p3), %s4373_s17, 3 }
   0x9   : > { %381 = sbr.rel (%p378_p3) target bundleno = 1386 (0x56a), region = 64  ;;  %p432_p6 = scmp.lt.s32.totalorder (!%p378_p3), %s4377_s18, 1 }
   0xa   : > { %s5098_s23 = smov (%p35_p4, %s5096_s23), 0  ;;  %s3314_s24 = sshll.u32 (!%p378_p3), %s4373_s17, 4 }
   0xb   : > { %5085 = sst [smem:[#allocation4_spill]] %s5098_s23  ;;  %p441_p7 = scmp.lt.s32.totalorder (!%p378_p3), %s3314_s24, 63 }
   0xc   : > { %s5086_s0 = sld [smem:[#allocation5_spill]] (!%p378_p3)  ;;  %p3317_p8 = scmp.ne.s32.totalorder (!%p378_p3), %s4373_s17, 0 }
  0x10   : > { %s429_s25 = scalar_select %p428_p5, %s4373_s17, 3 }
  0x11   : > { %s5100_s18 = smov (!%p432_p6, %s4377_s18), 1  ;;  %s5102_s24 = smov (!%p441_p7, %s3314_s24), 63 }
  0x12   : > { %s3311_s26 = sshll.u32 %s429_s25, 2  ;;  %s4500_s30 = sshll.u32 %s5100_s18, 3  ;;  %vm454_vm0 = vcmask (!%p3317_p8), 130048   ;;  %v4391_v0 = vmov (!%p3317_p8), 0.0  }
  0x13   : > { %s4498_s29 = scalar_lea.vmem %s5086_s0, %s3311_s26  ;;  %s435_s14 = scalar_lea.vmem %s5072_s1, %s4500_s30  ;;  %455 = vst.msk [vmem:[#allocation2] sm:$0xff] (!%p3317_p8), %vm454_vm0, %v4391_v0  ;;  %456 = vst.msk [vmem:[#allocation2 + $0x8] sm:$0xff] (!%p3317_p8), %vm454_vm0, %v4391_v0 }
  0x14   : > { %s439_s23 = scalar_lea.vmem %s5073_s2, %s4500_s30  ;;  %s449_s27 = scalar_lea.vmem %s5082_s11, %s4500_s30 }
  0x15   : > { %s3315_s26 = sshll.u32 %s5102_s24, 3  ;;  %453 = sbr.rel (%p3317_p8) target bundleno = 28 (0x1c), region = 68 }
  0x16   : > { %s4517_s0 = scalar_lea.vmem %s5074_s3, %s3315_s26 }
  0x1c PF: > { %v461_v1 = vld [vmem:[%s439_s23] sm:$0xff]  ;;  %v4392_v4 = vmov 0   ;;  %v4393_v5 = vmov 2   ;;  %s4394_s22 = smov 127   ;;  %v4395_v6 = vmov 1   ;;  %s4396_s24 = smov 126  }
  0x1d   : > { %v460_v2 = vld [vmem:[%s435_s14] sm:$0xff]  ;;  %v462_v3 = vmul.f32 %v461_v1, %v461_v1  ;;  %4338 = vset.pattern.permute.xlu1 %v4392_v4  ;;  %4340 = vset.pattern.permute.xlu0 %v4393_v5  ;;  %v4524_v8 = vld [vmem:[%s4517_s0 + $0x8] sm:$0xff]  ;;  %v4539_v14 = vld [vmem:[%s4517_s0 + $0x10] sm:$0xff]  ;;  %vm1258_vm1 = vcmask 130048   ;;  %p3321_p9 = scmp.ne.s32.totalorder %s4373_s17, 3 }
  0x1e   : > { %478 = vperm.xlu1 %4338, %v460_v2   ;;  %v4521_v7 = vld [vmem:[%s4517_s0] sm:$0xff]  ;;  %v576_v10 = vand.u32 4294901760, %v4524_v8  ;;  %v4542_v15 = vld [vmem:[%s4517_s0 + $0x18] sm:$0xff]  ;;  %v579_v17 = vand.u32 4294901760, %v4539_v14  ;;  %v4556_v22 = vld [vmem:[%s4517_s0 + $0x28] sm:$0xff]  ;;  %vm4398_vm2 = vmmov (!%p3321_p9), 0  }
  0x1f   : > { %464 = vrot.lane.b32.xlu0 %v462_v3, %s4394_s22  ;;  %v573_v9 = vand.u32 4294901760, %v4521_v7  ;;  %v582_v18 = vand.u32 4294901760, %v4542_v15  ;;  %v4553_v21 = vld [vmem:[%s4517_s0 + $0x20] sm:$0xff]  ;;  %v588_v24 = vand.u32 4294901760, %v4556_v22  ;;  %v4571_v26 = vld [vmem:[%s4517_s0 + $0x30] sm:$0xff]  ;;  %v4574_v27 = vld [vmem:[%s4517_s0 + $0x38] sm:$0xff] }
  0x20   : > { %v585_v23 = vand.u32 4294901760, %v4553_v21  ;;  %v591_v28 = vand.u32 4294901760, %v4571_v26  ;;  %v594_v29 = vand.u32 4294901760, %v4574_v27  ;;  %v4589_v31 = vld [vmem:[%s4517_s0 + $0x40] sm:$0xff]  ;;  %v4592_v32 = vld [vmem:[%s4517_s0 + $0x48] sm:$0xff]  ;;  %v4607_v36 = vld [vmem:[%s4517_s0 + $0x50] sm:$0xff]  ;;  %v4668_v52 = vsub.f32 %v4524_v8, %v576_v10 }
  0x21   : > { %v4532_v11 = vpack.c.bf16 %v576_v10, %v573_v9  ;;  %v4550_v20 = vpack.c.bf16 %v582_v18, %v579_v17  ;;  %v597_v33 = vand.u32 4294901760, %v4589_v31  ;;  %v600_v34 = vand.u32 4294901760, %v4592_v32  ;;  %v4610_v37 = vld [vmem:[%s4517_s0 + $0x58] sm:$0xff]  ;;  %v4625_v41 = vld [vmem:[%s4517_s0 + $0x60] sm:$0xff]  ;;  %v4628_v42 = vld [vmem:[%s4517_s0 + $0x68] sm:$0xff] }
  0x22   : > { %4339 = vset.pattern.permute.xlu1 %v4395_v6  ;;  %v4568_v25 = vpack.c.bf16 %v588_v24, %v585_v23  ;;  %v4585_v30 = vpack.c.bf16 %v594_v29, %v591_v28  ;;  %v603_v38 = vand.u32 4294901760, %v4607_v36  ;;  %v606_v39 = vand.u32 4294901760, %v4610_v37  ;;  %v4643_v46 = vld [vmem:[%s4517_s0 + $0x70] sm:$0xff]  ;;  %v4646_v47 = vld [vmem:[%s4517_s0 + $0x78] sm:$0xff] }
  0x23   : > { %468 = vrot.lane.b32.xlu0 %v462_v3, %s4396_s24  ;;  %487 = vperm.xlu1 %4339, %v460_v2   ;;  %v4603_v35 = vpack.c.bf16 %v600_v34, %v597_v33  ;;  %v609_v43 = vand.u32 4294901760, %v4625_v41  ;;  %v612_v44 = vand.u32 4294901760, %v4628_v42  ;;  %v615_v48 = vand.u32 4294901760, %v4643_v46 }
  0x24   : > { %4054 = vmatprep.subr.bf16.mxu0 %v4532_v11  ;;  %3958 = vmatprep.subr.bf16.mxu1 %v4532_v11  ;;  %v4621_v40 = vpack.c.bf16 %v606_v39, %v603_v38  ;;  %v618_v49 = vand.u32 4294901760, %v4646_v47  ;;  %v4663_v51 = vsub.f32 %v4521_v7, %v573_v9  ;;  %v683_v54 = vand.u32 4294901760, %v4668_v52 }
  0x25   : > { %4056 = vmatpush3.bf16.msra.mxu0 %v4532_v11  ;;  %3960 = vmatpush3.bf16.msra.mxu1 %v4532_v11  ;;  %v4639_v45 = vpack.c.bf16 %v612_v44, %v609_v43  ;;  %v4683_v58 = vsub.f32 %v4539_v14, %v579_v17  ;;  %v4689_v59 = vsub.f32 %v4542_v15, %v582_v18  ;;  %vm2215_vm3 = vcmask (!%p3321_p9), 261120  }
  0x26   : > { %4058 = vmatprep.subr.bf16.mxu0 %v4550_v20  ;;  %3962 = vmatprep.subr.bf16.mxu1 %v4550_v20  ;;  %v4657_v50 = vpack.c.bf16 %v618_v49, %v615_v48  ;;  %v676_v53 = vand.u32 4294901760, %v4663_v51  ;;  %v684_v57 = vsub.f32 %v4668_v52, %v683_v54  ;;  %v717_v14 = vsub.f32 %v4571_v26, %v591_v28 }
  0x27   : > { %4341 = vset.pattern.permute.xlu1 %v4392_v4  ;;  %496 = vperm.xlu0 %4340, %v460_v2   ;;  %v690_v62 = vand.u32 4294901760, %v4683_v58  ;;  %v697_v63 = vand.u32 4294901760, %v4689_v59  ;;  %v4699_v2 = vsub.f32 %v4553_v21, %v585_v23  ;;  %v738_v26 = vsub.f32 %v4592_v32, %v600_v34 }
  0x28   : > { %507 = vperm.xlu1 %4341, %v461_v1   ;;  %v4675_v55 = vpack.c.bf16 %v683_v54, %v676_v53  ;;  %v677_v56 = vsub.f32 %v4663_v51, %v676_v53  ;;  %v685_v61 = vand.u32 4294901760, %v684_v57  ;;  %v752_v32 = vsub.f32 %v4610_v37, %v606_v39 }
  0x29   : > { %4060 = vmatpush3.bf16.msra.mxu0 %v4550_v20  ;;  %3964 = vmatpush3.bf16.msra.mxu1 %v4550_v20  ;;  %v704_v7 = vand.u32 4294901760, %v4699_v2  ;;  %vm3204_vm4 = vcmask (!%p3321_p9), 31744  }
  0x2a   : > { %4062 = vmatprep.subr.bf16.mxu0 %v4568_v25  ;;  %3966 = vmatprep.subr.bf16.mxu1 %v4568_v25  ;;  %v678_v60 = vand.u32 4294901760, %v677_v56 }
  0x2b   : > { %518 = vperm.xlu0 %4340, %v461_v1  }
  0x2c   : > { %4342 = vset.pattern.permute.xlu1 %v4395_v6  ;;  %v4693_v0 = vpack.c.bf16 %v685_v61, %v678_v60 }
  0x2d   : > { %512 = vperm.xlu1 %4342, %v461_v1   ;;  %4064 = vmatpush3.bf16.msra.mxu0 %v4568_v25  ;;  %v691_v1 = vsub.f32 %v4683_v58, %v690_v62 }
  0x2e   : > { %3968 = vmatpush3.bf16.msra.mxu1 %v4568_v25  ;;  %4066 = vmatprep.subr.bf16.mxu0 %v4585_v30 }
  0x2f   : > { %4344 = vset.pattern.permute.xlu0 %v4395_v6  ;;  %3970 = vmatprep.subr.bf16.mxu1 %v4585_v30  ;;  %v692_v6 = vand.u32 4294901760, %v691_v1  ;;  %v753_v1 = vand.u32 4294901760, %v752_v32 }
  0x30   : > { %537 = vperm.xlu0 %4344, %v462_v3  }
  0x31   : > { %4343 = vset.pattern.permute.xlu1 %v4392_v4  ;;  %4068 = vmatpush3.bf16.msra.mxu0 %v4585_v30  ;;  %v4706_v4 = vpack.c.bf16 %v697_v63, %v690_v62  ;;  %v745_v62 = vsub.f32 %v4607_v36, %v603_v38  ;;  %v766_v36 = vsub.f32 %v4628_v42, %v612_v44 }
  0x32   : > { %532 = vperm.xlu1 %4343, %v462_v3   ;;  %3972 = vmatpush3.bf16.msra.mxu1 %v4585_v30  ;;  %v780_v42 = vsub.f32 %v4646_v47, %v618_v49  ;;  %v4776_v47 = vpack.c.bf16 %v4689_v59, %v4683_v58 }
  0x33   : > { %4070 = vmatprep.subr.bf16.mxu0 %v4603_v35  ;;  %3974 = vmatprep.subr.bf16.mxu1 %v4603_v35  ;;  %v767_v39 = vand.u32 4294901760, %v766_v36 }
  0x34   : > { %4346 = vset.pattern.permute.xlu0 %v4393_v5 }
  0x35   : > { %4072 = vmatpush3.bf16.msra.mxu0 %v4603_v35 }
  0x36   : > { %3976 = vmatpush3.bf16.msra.mxu1 %v4603_v35  ;;  %4074 = vmatprep.subr.bf16.mxu0 %v4621_v40 }
  0x37   : > { %3978 = vmatprep.subr.bf16.mxu1 %v4621_v40 }
  0x39   : > { %4076 = vmatpush3.bf16.msra.mxu0 %v4621_v40 }
  0x3a   : > { %3980 = vmatpush3.bf16.msra.mxu1 %v4621_v40  ;;  %4078 = vmatprep.subr.bf16.mxu0 %v4639_v45 }
  0x3b   : > { %3982 = vmatprep.subr.bf16.mxu1 %v4639_v45 }
  0x3d   : > { %4080 = vmatpush3.bf16.msra.mxu0 %v4639_v45 }
  0x3e   : > { %3984 = vmatpush3.bf16.msra.mxu1 %v4639_v45  ;;  %4082 = vmatprep.subr.bf16.mxu0 %v4657_v50 }
  0x3f   : > { %3986 = vmatprep.subr.bf16.mxu1 %v4657_v50 }
  0x41   : > { %4084 = vmatpush3.bf16.msra.mxu0 %v4657_v50 }
  0x42   : > { %3988 = vmatpush3.bf16.msra.mxu1 %v4657_v50  ;;  %4086 = vmatprep.subr.bf16.mxu0 %v4675_v55 }
  0x43   : > { %3990 = vmatprep.subr.bf16.mxu1 %v4693_v0 }
  0x91   : > { %v465_v12 = vpop.permute.xlu0 %464 }
  0x92   : > { %v467_v13 = vadd.f32 %v465_v12, %v462_v3  ;;  %v705_v12 = vsub.f32 %v4699_v2, %v704_v7 }
  0x94   : > { %v706_v17 = vand.u32 4294901760, %v705_v12 }
  0x95   : > { %v469_v16 = vpop.permute.xlu0 %468 }
  0x96   : > { %v471_v19 = vadd.f32 %v469_v16, %v467_v13  ;;  %v724_v16 = vsub.f32 %v4574_v27, %v594_v29  ;;  %v739_v29 = vand.u32 4294901760, %v738_v26 }
  0x98   : > { %525 = vperm.xlu1 %4343, %v471_v19   ;;  %v718_v19 = vand.u32 4294901760, %v717_v14  ;;  %v725_v21 = vand.u32 4294901760, %v724_v16  ;;  %v740_v61 = vsub.f32 %v738_v26, %v739_v29 }
  0x9a   : > { %v719_v23 = vsub.f32 %v717_v14, %v718_v19  ;;  %v4732_v28 = vpack.c.bf16 %v725_v21, %v718_v19  ;;  %v726_v53 = vsub.f32 %v724_v16, %v725_v21  ;;  %v741_v34 = vand.u32 4294901760, %v740_v61 }
  0x9b   : > { %v773_v19 = vsub.f32 %v4643_v46, %v615_v48  ;;  %v4782_v61 = vpack.c.bf16 %v724_v16, %v717_v14 }
  0x9c   : > { %4345 = vset.pattern.permute.xlu1 %v4393_v5  ;;  %v698_v5 = vsub.f32 %v4689_v59, %v697_v63  ;;  %v720_v54 = vand.u32 4294901760, %v719_v23  ;;  %v727_v56 = vand.u32 4294901760, %v726_v53  ;;  %v746_v63 = vand.u32 4294901760, %v745_v62 }
  0x9d   : > { %543 = vperm.xlu1 %4345, %v462_v3   ;;  %v4704_v3 = vsub.f32 %v4556_v22, %v588_v24  ;;  %v731_v24 = vsub.f32 %v4589_v31, %v597_v33  ;;  %v774_v21 = vand.u32 4294901760, %v773_v19  ;;  %v781_v23 = vand.u32 4294901760, %v780_v42 }
  0x9e   : > { %v699_v9 = vand.u32 4294901760, %v698_v5  ;;  %v4739_v31 = vpack.c.bf16 %v727_v56, %v720_v54  ;;  %v4752_v38 = vpack.c.bf16 %v753_v1, %v746_v63 }
  0x9f   : > { %v711_v8 = vand.u32 4294901760, %v4704_v3  ;;  %v732_v27 = vand.u32 4294901760, %v731_v24  ;;  %v775_v54 = vsub.f32 %v773_v19, %v774_v21  ;;  %v4780_v49 = vpack.c.bf16 %v4704_v3, %v4699_v2  ;;  %v3320_v2 = vld [vmem:[%s4498_s29 + $0x2] ss:$0 sm:$0xff] }
  0xa0   : > { %v4719_v15 = vpack.c.bf16 %v699_v9, %v692_v6  ;;  %v747_v6 = vsub.f32 %v745_v62, %v746_v63 }
  0xa1   : > { %v4712_v10 = vpack.c.bf16 %v711_v8, %v704_v7  ;;  %v712_v13 = vsub.f32 %v4704_v3, %v711_v8  ;;  %v4734_v57 = vpack.c.bf16 %v739_v29, %v732_v27  ;;  %v733_v60 = vsub.f32 %v731_v24, %v732_v27 }
  0xa2   : > { %v759_v7 = vsub.f32 %v4625_v41, %v609_v43  ;;  %v754_v8 = vsub.f32 %v752_v32, %v753_v1  ;;  %v748_v9 = vand.u32 4294901760, %v747_v6  ;;  %v4766_v27 = vpack.c.bf16 %v781_v23, %v774_v21  ;;  %v3318_v6 = vld [vmem:[%s4498_s29] ss:$0 sm:$0xff] }
  0xa3   : > { %v713_v18 = vand.u32 4294901760, %v712_v13  ;;  %v734_v33 = vand.u32 4294901760, %v733_v60  ;;  %v782_v29 = vsub.f32 %v780_v42, %v781_v23  ;;  %v776_v56 = vand.u32 4294901760, %v775_v54 }
  0xa4   : > { %v760_v37 = vand.u32 4294901760, %v759_v7  ;;  %v755_v12 = vand.u32 4294901760, %v754_v8  ;;  %v4772_v60 = vpack.c.bf16 %v4668_v52, %v4663_v51  ;;  %v4788_v63 = vpack.c.bf16 %v766_v36, %v759_v7  ;;  %v479_v51 = vpop.permute.xlu1 %478  ;;  %v3319_v8 = vld [vmem:[%s4498_s29 + $0x1] ss:$0 sm:$0xff] }
  0xa5   : > { %v4724_v22 = vpack.c.bf16 %v713_v18, %v706_v17  ;;  %v4744_v5 = vpack.c.bf16 %v741_v34, %v734_v33  ;;  %v768_v18 = vsub.f32 %v766_v36, %v767_v39  ;;  %v783_v46 = vand.u32 4294901760, %v782_v29 }
  0xa6   : > { %v4754_v13 = vpack.c.bf16 %v767_v39, %v760_v37  ;;  %v761_v17 = vsub.f32 %v759_v7, %v760_v37  ;;  %v4759_v41 = vpack.c.bf16 %v755_v12, %v748_v9  ;;  %v4784_v33 = vpack.c.bf16 %v738_v26, %v731_v24  ;;  %v497_v37 = vpop.permute.xlu0 %496 }
  0xa7   : > { %v769_v44 = vand.u32 4294901760, %v768_v18  ;;  %v4768_v48 = vpack.c.bf16 %v783_v46, %v776_v56  ;;  %v4786_v34 = vpack.c.bf16 %v752_v32, %v745_v62  ;;  %v4790_v1 = vpack.c.bf16 %v780_v42, %v773_v19 }
  0xa8   : > { %v762_v43 = vand.u32 4294901760, %v761_v17  ;;  %v488_v52 = vpop.permute.xlu1 %487  ;;  %v481_v59 = vsub.f32 %v3318_v6, %v479_v51  ;;  %v499_v14 = vsub.f32 %v3320_v2, %v497_v37 }
  0xa9   : > { %v490_v9 = vsub.f32 %v3319_v8, %v488_v52 }
  0xaa   : > { %v4764_v53 = vpack.c.bf16 %v769_v44, %v762_v43  ;;  %v500_v62 = vmul.f32 %v481_v59, %v481_v59  ;;  %v519_v32 = vpop.permute.xlu0 %518  ;;  %v502_v39 = vmul.f32 %v499_v14, %v499_v14 }
  0xab   : > { %v501_v26 = vmul.f32 %v490_v9, %v490_v9  ;;  %v521_v7 = vmul.f32 %v519_v32, %v499_v14 }
  0xac   : > { %v508_v58 = vpop.permute.xlu1 %507 }
  0xad   : > { %v510_v16 = vmul.f32 %v508_v58, %v481_v59  ;;  %v503_v12 = vadd.f32 %v501_v26, %v500_v62 }
  0xaf   : > { %v538_v19 = vpop.permute.xlu0 %537  ;;  %v504_v42 = vadd.f32 %v503_v12, %v502_v39 }
  0xb0   : > { %v513_v3 = vpop.permute.xlu1 %512  ;;  %v540_v23 = vmul.f32 %v538_v19, %v501_v26 }
  0xb1   : > { %v515_v24 = vmul.f32 %v513_v3, %v490_v9 }
  0xb3   : > { %v516_v36 = vadd.f32 %v515_v24, %v510_v16 }
  0xb4   : > { %v533_v17 = vpop.permute.xlu1 %532 }
  0xb5   : > { %v522_v18 = vadd.f32 %v521_v7, %v516_v36  ;;  %v535_v54 = vmul.f32 %v533_v17, %v500_v62 }
  0xb7   : > { %v529_v21 = vmul.f32 %v522_v18, %v522_v18  ;;  %v541_v51 = vadd.f32 %v540_v23, %v535_v54 }
 0x117   : > { %v526_v43 = vpop.permute.xlu1 %525 }
 0x118   : > { %v528_v44 = vmul.f32 %v526_v43, %v504_v42 }
 0x11a   : > { %v530_v29 = vsub.f32 %v528_v44, %v529_v21 }
 0x11c   : > { %v548_v56 = vsub.f32 0.0, %v530_v29  ;;  %v544_v46 = vpop.permute.xlu1 %543 }
 0x11d   : > { %v546_v52 = vmul.f32 %v544_v46, %v502_v39 }
 0x11e   : > { %v550_v6 = vmul.f32 1.442695, %v548_v56 }
 0x11f   : > { %v547_v8 = vadd.f32 %v546_v52, %v541_v51 }
 0x120   : > { %4347 = vpow2.f32 %v550_v6 }
 0x121   : > { %v549_v58 = vsub.f32 0.0, %v547_v8 }
 0x123   : > { %v552_v59 = vmul.f32 1.442695, %v549_v58 }
 0x125   : > { %4349 = vpow2.f32 %v552_v59 }
 0x12a   : > { %v4348_v9 = vpop.eup %4347 }
 0x12b   : > { %v653_v37 = vand.u32 4294901760, %v4348_v9 }
 0x12d   : > { %v654_v2 = vsub.f32 %v4348_v9, %v653_v37 }
 0x12f   : > { %v4350_v3 = vpop.eup %4349  ;;  %v655_v14 = vand.u32 4294901760, %v654_v2 }
 0x130   : > { %v4795_v16 = vand.u32 4294901760, %v4350_v3 }
 0x131   : > { %3668 = vmatprep.mubr.f32.mxu0 %v655_v14  ;;  %v656_v24 = vsub.f32 %v654_v2, %v655_v14 }
 0x132   : > { %v4798_v26 = vsub.f32 %v4350_v3, %v4795_v16 }
 0x133   : > { %v657_v62 = vand.u32 4294901760, %v656_v24  ;;  %v2204_v24 = vld [vmem:[%s5078_s7] sm:$0xff] (!%p3321_p9) }
 0x134   : > { %v665_v32 = vand.u32 4294901760, %v4798_v26 }
 0x135   : > { %3563 = vmatprep.mubr.f32.mxu1 %v657_v62  ;;  %v2220_v62 = vand.u32 (!%p3321_p9), 4294901760, %v2204_v24 }
 0x136   : > { %3669 = vmatmul.mubr.f32.vlgmr.msra.gmra.mrb[0].mxu0 %v665_v32  ;;  %v666_v7 = vsub.f32 %v4798_v26, %v665_v32 }
 0x137   : > { %4088 = vmatpush3.bf16.msra.mxu0 %v4675_v55  ;;  %3703 = vmatprep.mubr.f32.mxu0 %v653_v37 }
 0x138   : > { %4090 = vmatprep.subr.bf16.mxu0 %v4706_v4  ;;  %v667_v36 = vand.u32 4294901760, %v666_v7 }
 0x13a   : > { %3564 = vmatmul.mubr.f32.vlgmr.msra.gmra.mrb[0].mxu1 %v667_v36  ;;  %v4941_v36 = vsub.f32 (!%p3321_p9), %v2204_v24, %v2220_v62 }
 0x13b   : > { %3992 = vmatpush3.bf16.msra.mxu1 %v4693_v0  ;;  %4092 = vmatpush3.bf16.msra.mxu0 %v4706_v4 }
 0x13c   : > { %3598 = vmatprep.mubr.f32.mxu1 %v653_v37  ;;  %3994 = vmatprep.subr.bf16.mxu1 %v4719_v15 }
 0x13d   : > { %4094 = vmatprep.subr.bf16.mxu0 %v4712_v10 }
 0x13f   : > { %3996 = vmatpush3.bf16.msra.mxu1 %v4719_v15  ;;  %4096 = vmatpush3.bf16.msra.mxu0 %v4712_v10  ;;  %v1270_v10 = vld [vmem:[%s5076_s5 + $0x8] sm:$0xff] (!%p3321_p9) }
 0x140   : > { %3998 = vmatprep.subr.bf16.mxu1 %v4724_v22  ;;  %4098 = vmatprep.subr.bf16.mxu0 %v4732_v28 }
 0x143   : > { %4000 = vmatpush3.bf16.msra.mxu1 %v4724_v22  ;;  %4100 = vmatpush3.bf16.msra.mxu0 %v4732_v28  ;;  %v4397_v22 = vmov (!%p3321_p9), 0.0|0.0  }
 0x144   : > { %4002 = vmatprep.subr.bf16.mxu1 %v4739_v31  ;;  %4102 = vmatprep.subr.bf16.mxu0 %v4734_v57 }
 0x147   : > { %4004 = vmatpush3.bf16.msra.mxu1 %v4739_v31  ;;  %4104 = vmatpush3.bf16.msra.mxu0 %v4734_v57  ;;  %v1278_v57 = vand.u32 (!%p3321_p9), 4294901760, %v1270_v10 }
 0x148   : > { %4006 = vmatprep.subr.bf16.mxu1 %v4744_v5  ;;  %4106 = vmatprep.subr.bf16.mxu0 %v4752_v38 }
 0x14b   : > { %4008 = vmatpush3.bf16.msra.mxu1 %v4744_v5  ;;  %4108 = vmatpush3.bf16.msra.mxu0 %v4752_v38  ;;  %v1267_v5 = vld [vmem:[%s5075_s4] sm:$0xff] (!%p3321_p9)  ;;  %v1268_v38 = vld [vmem:[%s5075_s4 + $0x8] sm:$0xff] (!%p3321_p9) }
 0x14c   : > { %4010 = vmatprep.subr.bf16.mxu1 %v4759_v41  ;;  %4110 = vmatprep.subr.bf16.mxu0 %v4754_v13 }
 0x14f   : > { %4012 = vmatpush3.bf16.msra.mxu1 %v4759_v41  ;;  %4112 = vmatpush3.bf16.msra.mxu0 %v4754_v13  ;;  %v4399_v41 = vmov (!%p3321_p9), 0.0  }
 0x150   : > { %4014 = vmatprep.subr.bf16.mxu1 %v4764_v53  ;;  %4114 = vmatprep.subr.bf16.mxu0 %v4766_v27 }
 0x153   : > { %4016 = vmatpush3.bf16.msra.mxu1 %v4764_v53  ;;  %4116 = vmatpush3.bf16.msra.mxu0 %v4766_v27  ;;  %v1737_v27 = vand.u32 (!%p3321_p9), 4294901760, %v1267_v5 }
 0x154   : > { %4018 = vmatprep.subr.bf16.mxu1 %v4768_v48  ;;  %4118 = vmatprep.subr.bf16.mxu0 %v4532_v11 }
 0x155   : > { %v1815_v39 = vsub.f32 (!%p3321_p9), %v1267_v5, %v1737_v27 }
 0x156   : > { %3704 = vmatmul.mubr.f32.vlgmr.msra.gmra.mrb[0].mxu0 %v4795_v16 }
 0x157   : > { %4020 = vmatpush3.bf16.msra.mxu1 %v4768_v48  ;;  %4120 = vmatpush3.bf16.msra.mxu0 %v4532_v11  ;;  %v1740_v48 = vand.u32 (!%p3321_p9), 4294901760, %v1268_v38  ;;  %v1816_v54 = vand.u32 (!%p3321_p9), 4294901760, %v1815_v39 }
 0x158   : > { %3738 = vmatprep.mubr.f32.mxu0 %v653_v37  ;;  %4022 = vmatprep.subr.bf16.mxu1 %v4772_v60 }
 0x159   : > { %4122 = vmatprep.subr.bf16.mxu0 %v4550_v20  ;;  %v1822_v12 = vsub.f32 (!%p3321_p9), %v1268_v38, %v1740_v48  ;;  %v1817_v51 = vsub.f32 (!%p3321_p9), %v1815_v39, %v1816_v54  ;;  %v4168_v37 = vpack.c.bf16 (!%p3321_p9), %v1740_v48, %v1737_v27 }
 0x15a   : > { %3599 = vmatmul.mubr.f32.vlgmr.msra.gmra.mrb[0].mxu1 %v4795_v16 }
 0x15b   : > { %4024 = vmatpush3.bf16.msra.mxu1 %v4772_v60  ;;  %3633 = vmatprep.mubr.f32.mxu1 %v654_v2  ;;  %v1823_v29 = vand.u32 (!%p3321_p9), 4294901760, %v1822_v12  ;;  %v1818_v58 = vand.u32 (!%p3321_p9), 4294901760, %v1817_v51  ;;  %v4174_v14 = vpack.c.bf16 (!%p3321_p9), %v1822_v12, %v1815_v39 }
 0x15c   : > { %4124 = vmatpush3.bf16.msra.mxu0 %v4550_v20  ;;  %4026 = vmatprep.subr.bf16.mxu1 %v4776_v47 }
 0x15d   : > { %4126 = vmatprep.subr.bf16.mxu0 %v4568_v25  ;;  %v1824_v52 = vsub.f32 (!%p3321_p9), %v1822_v12, %v1823_v29 }
 0x15f   : > { %4028 = vmatpush3.bf16.msra.mxu1 %v4776_v47  ;;  %v1825_v59 = vand.u32 (!%p3321_p9), 4294901760, %v1824_v52 }
 0x160   : > { %4128 = vmatpush3.bf16.msra.mxu0 %v4568_v25  ;;  %4030 = vmatprep.subr.bf16.mxu1 %v4780_v49  ;;  %v555_v25 = vld [vmem:[#allocation2 + $0x8] sm:$0xff] }
 0x161   : > { %4130 = vmatprep.subr.bf16.mxu0 %v4585_v30  ;;  %v4171_v2 = vpack.c.bf16 (!%p3321_p9), %v1825_v59, %v1818_v58 }
 0x163   : > { %4032 = vmatpush3.bf16.msra.mxu1 %v4780_v49 }
 0x164   : > { %4132 = vmatpush3.bf16.msra.mxu0 %v4585_v30  ;;  %4034 = vmatprep.subr.bf16.mxu1 %v4782_v61 }
 0x165   : > { %4134 = vmatprep.subr.bf16.mxu0 %v4603_v35 }
 0x167   : > { %4036 = vmatpush3.bf16.msra.mxu1 %v4782_v61  ;;  %v1360_v61 = vsub.f32 (!%p3321_p9), %v1270_v10, %v1278_v57 }
 0x168   : > { %4136 = vmatpush3.bf16.msra.mxu0 %v4603_v35  ;;  %4038 = vmatprep.subr.bf16.mxu1 %v4784_v33 }
 0x169   : > { %4138 = vmatprep.subr.bf16.mxu0 %v4621_v40 }
 0x16b   : > { %4040 = vmatpush3.bf16.msra.mxu1 %v4784_v33 }
 0x16c   : > { %4140 = vmatpush3.bf16.msra.mxu0 %v4621_v40  ;;  %4042 = vmatprep.subr.bf16.mxu1 %v4786_v34  ;;  %v554_v40 = vld [vmem:[#allocation2] sm:$0xff] }
 0x16d   : > { %4142 = vmatprep.subr.bf16.mxu0 %v4639_v45 }
 0x16f   : > { %4044 = vmatpush3.bf16.msra.mxu1 %v4786_v34 }
 0x170   : > { %4144 = vmatpush3.bf16.msra.mxu0 %v4639_v45  ;;  %4046 = vmatprep.subr.bf16.mxu1 %v4788_v63 }
 0x171   : > { %4146 = vmatprep.subr.bf16.mxu0 %v4657_v50 }
 0x173   : > { %4048 = vmatpush3.bf16.msra.mxu1 %v4788_v63 }
 0x174   : > { %4148 = vmatpush3.bf16.msra.mxu0 %v4657_v50  ;;  %4050 = vmatprep.subr.bf16.mxu1 %v4790_v1  ;;  %v1269_v50 = vld [vmem:[%s5076_s5] sm:$0xff] (!%p3321_p9) }
 0x175   : > { %4149 = vmatprep.subr.bf16.mxu0 (!%p3321_p9), %v4397_v22  ;;  %v1275_v28 = vand.u32 (!%p3321_p9), 4294901760, %v1269_v50 }
 0x177   : > { %3739 = vmatmul.mubr.f32.vlgmr.msra.gmra.mrb[0].mxu0 %v4795_v16  ;;  %4052 = vmatpush3.bf16.msra.mxu1 %v4790_v1  ;;  %v4150_v47 = vpack.c.bf16 (!%p3321_p9), %v1278_v57, %v1275_v28  ;;  %v1353_v49 = vsub.f32 (!%p3321_p9), %v1269_v50, %v1275_v28  ;;  %v1361_v1 = vand.u32 (!%p3321_p9), 4294901760, %v1360_v61  ;;  %v4180_v16 = vpack.c.bf16 (!%p3321_p9), %v1823_v29, %v1816_v54 }
 0x178   : > { %4152 = vmatprep.subr.bf16.mxu1 (!%p3321_p9), %v4397_v22  ;;  %3745 = vmatprep.mubr.msk.f32.mxu0 (!%p3321_p9), %vm4398_vm2, %v4399_v41 }
 0x179   : > { %4151 = vmatpush3.bf16.msra.mxu0 (!%p3321_p9), %v4150_v47  ;;  %v1354_v63 = vand.u32 (!%p3321_p9), 4294901760, %v1353_v49  ;;  %v1362_v19 = vsub.f32 (!%p3321_p9), %v1360_v61, %v1361_v1  ;;  %v4156_v43 = vpack.c.bf16 (!%p3321_p9), %v1360_v61, %v1353_v49 }
 0x17a   : > { %3634 = vmatmul.mubr.f32.vlgmr.msra.gmra.mrb[0].mxu1 %v4798_v26  ;;  %4155 = vmatprep.subr.bf16.mxu0 (!%p3321_p9), %v4397_v22  ;;  %v2205_v26 = vld [vmem:[%s5078_s7 + $0x8] sm:$0xff] (!%p3321_p9) }
 0x17b   : > { %3752 = vmatprep.mubr.msk.f32.mxu1 (!%p3321_p9), %vm4398_vm2, %v4399_v41  ;;  %v1355_v18 = vsub.f32 (!%p3321_p9), %v1353_v49, %v1354_v63  ;;  %v1363_v23 = vand.u32 (!%p3321_p9), 4294901760, %v1362_v19  ;;  %v4162_v8 = vpack.c.bf16 (!%p3321_p9), %v1361_v1, %v1354_v63  ;;  %v2223_v32 = vand.u32 (!%p3321_p9), 4294901760, %v2205_v26 }
 0x17d   : > { %v1356_v21 = vand.u32 (!%p3321_p9), 4294901760, %v1355_v18  ;;  %v4939_v7 = vpack.c.bf16 (!%p3321_p9), %v2223_v32, %v2220_v62 }
 0x17f   : > { %v4153_v46 = vpack.c.bf16 (!%p3321_p9), %v1363_v23, %v1356_v21 }
 0x181   : > { %4154 = vmatpush3.bf16.msra.mxu1 (!%p3321_p9), %v4153_v46 }
 0x182   : > { %4158 = vmatprep.subr.bf16.mxu1 (!%p3321_p9), %v4397_v22 }
 0x24a   : > { %v3740_v11 = vpop.f32.mrb[0].mxu0 }
 0x24b   : > { %v1246_v20 = vpop.f32.mrb[1].mxu0 }
 0x24d   : > { %v3635_v30 = vpop.f32.mrb[0].mxu1  ;;  %1264 = sbr.rel (%p3321_p9) target bundleno = 1386 (0x56a), region = 72 }
 0x24e   : > { %v4257_v35 = vadd.f32 %v3740_v11, %v3635_v30  ;;  %v930_v45 = vpop.f32.mrb[1].mxu1  ;;  %v4943_v11 = vsub.f32 (!%p3321_p9), %v2205_v26, %v2223_v32  ;;  %v3322_v32 = vld [vmem:[%s5077_s6] ss:$0 sm:$0xff] (!%p3321_p9) }
 0x24f   : > { %v4258_v55 = vadd.f32 %v1246_v20, %v930_v45  ;;  %v2206_v20 = vld [vmem:[%s5078_s7 + $0x10] sm:$0xff] (!%p3321_p9) }
 0x250   : > { %v1257_v0 = vadd.f32 %v4257_v35, %v555_v25  ;;  %v2207_v25 = vld [vmem:[%s5078_s7 + $0x18] sm:$0xff] (!%p3321_p9)  ;;  %v2226_v30 = vand.u32 (!%p3321_p9), 4294901760, %v2206_v20  ;;  %v2308_v45 = vand.u32 (!%p3321_p9), 4294901760, %v4943_v11 }
 0x251   : > { %v1256_v4 = vadd.f32 %v4258_v55, %v554_v40  ;;  %v2229_v35 = vand.u32 (!%p3321_p9), 4294901760, %v2207_v25  ;;  %v2301_v40 = vand.u32 (!%p3321_p9), 4294901760, %v4941_v36 }
 0x252   : > { %1260 = vst.msk [vmem:[#allocation2 + $0x8] sm:$0xff] %vm1258_vm1, %v1257_v0  ;;  %v4957_v0 = vsub.f32 (!%p3321_p9), %v2206_v20, %v2226_v30  ;;  %v2309_v10 = vsub.f32 (!%p3321_p9), %v4943_v11, %v2308_v45 }
 0x253   : > { %1259 = vst.msk [vmem:[#allocation2] sm:$0xff] %vm1258_vm1, %v1256_v4  ;;  %v4955_v55 = vpack.c.bf16 (!%p3321_p9), %v2229_v35, %v2226_v30  ;;  %v4959_v4 = vsub.f32 (!%p3321_p9), %v2207_v25, %v2229_v35  ;;  %v2302_v50 = vsub.f32 (!%p3321_p9), %v4941_v36, %v2301_v40  ;;  %v4973_v49 = vpack.c.bf16 (!%p3321_p9), %v2308_v45, %v2301_v40 }
 0x254   : > { %v2315_v28 = vand.u32 4294901760, %v4957_v0 }
 0x255   : > { %v2322_v57 = vand.u32 4294901760, %v4959_v4 }
 0x256   : > { %v2316_v5 = vsub.f32 %v4957_v0, %v2315_v28 }
 0x257   : > { %v2323_v38 = vsub.f32 %v4959_v4, %v2322_v57  ;;  %v4975_v61 = vpack.c.bf16 %v2322_v57, %v2315_v28 }
 0x259   : > { %v1266_v15 = vld [vmem:[#allocation2 + $0x8] sm:$0xff]  ;;  %v2324_v27 = vand.u32 4294901760, %v2323_v38 }
 0x25a   : > { %v1272_v31 = vsel %vm1258_vm1, %v1266_v15, 0  ;;  %v1265_v13 = vld [vmem:[#allocation2] sm:$0xff]  ;;  %v2303_v15 = vand.u32 4294901760, %v2302_v50 }
 0x25b   : > { %v1341_v53 = vand.u32 4294901760, %v1272_v31  ;;  %v1734_v60 = vsel %vm1258_vm1, %v1265_v13, 0  ;;  %v2705_v50 = vld [vmem:[%s5080_s9] sm:$0xff] }
 0x25c   : > { %v4891_v34 = vand.u32 4294901760, %v1734_v60 }
 0x25d   : > { %v1342_v33 = vsub.f32 %v1272_v31, %v1341_v53  ;;  %3753 = vmatmul.mubr.f32.vlgmr.msra.gmra.mrb[0].mxu1 %v1341_v53  ;;  %v2310_v31 = vand.u32 4294901760, %v2309_v10  ;;  %v2706_v10 = vld [vmem:[%s5080_s9 + $0x8] sm:$0xff] }
 0x25e   : > { %v1804_v44 = vsub.f32 %v1734_v60, %v4891_v34  ;;  %4160 = vmatpush3.bf16.msra.mxu1 %v4150_v47  ;;  %3766 = vmatprep.mubr.msk.f32.mxu1 %vm4398_vm2, %v4399_v41  ;;  %v4198_v60 = vpack.c.bf16 %v4943_v11, %v4941_v36  ;;  %v2723_v28 = vand.u32 4294901760, %v2706_v10 }
 0x25f   : > { %v1343_v17 = vand.u32 4294901760, %v1342_v33  ;;  %4164 = vmatprep.subr.bf16.mxu1 %v4397_v22  ;;  %v4192_v13 = vpack.c.bf16 %v2310_v31, %v2303_v15  ;;  %v2720_v15 = vand.u32 4294901760, %v2705_v50 }
 0x260   : > { %v1805_v6 = vand.u32 4294901760, %v1804_v44  ;;  %v2807_v31 = vsub.f32 %v2706_v10, %v2723_v28 }
 0x261   : > { %v1344_v42 = vsub.f32 %v1342_v33, %v1343_v17  ;;  %3767 = vmatmul.mubr.f32.vlgmr.msra.gmra.mrb[2].mxu1 %v1343_v17  ;;  %v5012_v57 = vpack.c.bf16 %v2723_v28, %v2720_v15 }
 0x262   : > { %v1806_v9 = vsub.f32 %v1804_v44, %v1805_v6  ;;  %4166 = vmatpush3.bf16.msra.mxu1 %v4150_v47  ;;  %3780 = vmatprep.mubr.msk.f32.mxu1 %vm4398_vm2, %v4399_v41  ;;  %v4201_v47 = vpack.c.bf16 %v4959_v4, %v4957_v0 }
 0x263   : > { %v1345_v56 = vand.u32 4294901760, %v1344_v42  ;;  %4170 = vmatprep.subr.bf16.mxu1 %v4397_v22 }
 0x264   : > { %v1807_v3 = vand.u32 4294901760, %v1806_v9 }
 0x265   : > { %3746 = vmatmul.mubr.f32.vlgmr.msra.gmra.mrb[0].mxu0 %v1345_v56  ;;  %3781 = vmatmul.mubr.f32.vlgmr.msra.gmra.mrb[4].mxu1 %v1341_v53 }
 0x266   : > { %4157 = vmatpush3.bf16.msra.mxu0 %v4156_v43  ;;  %3759 = vmatprep.mubr.msk.f32.mxu0 %vm4398_vm2, %v4399_v41 }
 0x267   : > { %4161 = vmatprep.subr.bf16.mxu0 %v4397_v22  ;;  %4172 = vmatpush3.bf16.msra.mxu1 %v4171_v2 }
 0x268   : > { %3794 = vmatprep.mubr.msk.f32.mxu1 %vm4398_vm2, %v4399_v41  ;;  %4176 = vmatprep.subr.bf16.mxu1 %v4397_v22 }
 0x269   : > { %3760 = vmatmul.mubr.f32.vlgmr.msra.gmra.mrb[2].mxu0 %v1342_v33 }
 0x26a   : > { %4163 = vmatpush3.bf16.msra.mxu0 %v4162_v8  ;;  %3773 = vmatprep.mubr.msk.f32.mxu0 %vm4398_vm2, %v4399_v41 }
 0x26b   : > { %4167 = vmatprep.subr.bf16.mxu0 %v4397_v22  ;;  %3795 = vmatmul.mubr.f32.vlgmr.msra.gmra.mrb[6].mxu1 %v4891_v34 }
 0x26c   : > { %4178 = vmatpush3.bf16.msra.mxu1 %v4168_v37  ;;  %3808 = vmatprep.mubr.msk.f32.mxu1 %vm4398_vm2, %v4399_v41 }
 0x26d   : > { %3774 = vmatmul.mubr.f32.vlgmr.msra.gmra.mrb[4].mxu0 %v1341_v53  ;;  %4182 = vmatprep.subr.bf16.mxu1 %v4397_v22  ;;  %v2317_v53 = vand.u32 4294901760, %v2316_v5  ;;  %v2707_v5 = vld [vmem:[%s5080_s9 + $0x10] sm:$0xff] }
 0x26e   : > { %4169 = vmatpush3.bf16.msra.mxu0 %v4168_v37  ;;  %3787 = vmatprep.mubr.msk.f32.mxu0 %vm4398_vm2, %v4399_v41  ;;  %v2726_v38 = vand.u32 4294901760, %v2707_v5 }
 0x26f   : > { %4173 = vmatprep.subr.bf16.mxu0 %v4397_v22  ;;  %3809 = vmatmul.mubr.f32.vlgmr.msra.gmra.mrb[8].mxu1 %v1805_v6  ;;  %v4195_v48 = vpack.c.bf16 %v2324_v27, %v2317_v53  ;;  %v2808_v27 = vand.u32 4294901760, %v2807_v31 }
 0x270   : > { %4184 = vmatpush3.bf16.msra.mxu1 %v4168_v37  ;;  %3822 = vmatprep.mubr.msk.f32.mxu1 %vm4398_vm2, %v4399_v41 }
 0x271   : > { %3788 = vmatmul.mubr.f32.vlgmr.msra.gmra.mrb[6].mxu0 %v1807_v3  ;;  %4221 = vmatprep.subr.bf16.mxu1 %v4397_v22 }
 0x272   : > { %4175 = vmatpush3.bf16.msra.mxu0 %v4174_v14  ;;  %3801 = vmatprep.mubr.msk.f32.mxu0 %vm4398_vm2, %v4399_v41 }
 0x273   : > { %4179 = vmatprep.subr.bf16.mxu0 %v4397_v22  ;;  %3823 = vmatmul.mubr.f32.vlgmr.msra.gmra.mrb[10].mxu1 %v4891_v34 }
 0x274   : > { %3899 = vmatprep.mubr.msk.f32.mxu1 %vm4398_vm2, %v4399_v41  ;;  %4223 = vmatpush3.bf16.msra.mxu1 %v5012_v57 }
 0x275   : > { %3802 = vmatmul.mubr.f32.vlgmr.msra.gmra.mrb[8].mxu0 %v1804_v44  ;;  %4224 = vmatprep.subr.bf16.mxu1 %v4397_v22 }
 0x276   : > { %4181 = vmatpush3.bf16.msra.mxu0 %v4180_v16  ;;  %3815 = vmatprep.mubr.msk.f32.mxu0 %vm4398_vm2, %v4399_v41 }
 0x277   : > { %4185 = vmatprep.subr.bf16.mxu0 %v4397_v22 }
 0x279   : > { %3816 = vmatmul.mubr.f32.vlgmr.msra.gmra.mrb[10].mxu0 %v4891_v34 }
 0x27a   : > { %3833 = vmatprep.mubr.msk.f32.mxu0 %vm4398_vm2, %v4399_v41  ;;  %4187 = vmatpush3.bf16.msra.mxu0 %v4939_v7 }
 0x27b   : > { %4188 = vmatprep.subr.bf16.mxu0 %v4397_v22 }
 0x27e   : > { %4190 = vmatpush3.bf16.msra.mxu0 %v4955_v55 }
 0x27f   : > { %4191 = vmatprep.subr.bf16.mxu0 %v4397_v22 }
 0x330   : > { %v1428_v63 = vpop.f32.mrb[0].mxu1 }
 0x331   : > { %v3754_v12 = vpop.f32.mrb[1].mxu1 }
 0x334   : > { %v1579_v19 = vpop.f32.mrb[2].mxu1 }
 0x335   : > { %v3768_v43 = vpop.f32.mrb[3].mxu1 }
 0x338   : > { %v1347_v33 = vpop.f32.mrb[0].mxu0  ;;  %v1729_v54 = vpop.f32.mrb[4].mxu1 }
 0x339   : > { %v3747_v34 = vpop.f32.mrb[1].mxu0  ;;  %v1429_v39 = vadd.f32 %v1428_v63, %v1347_v33  ;;  %v3782_v56 = vpop.f32.mrb[5].mxu1 }
 0x33c   : > { %v1504_v1 = vpop.f32.mrb[2].mxu0 }
 0x33d   : > { %v3761_v17 = vpop.f32.mrb[3].mxu0  ;;  %v1505_v18 = vadd.f32 %v1504_v1, %v1429_v39 }
 0x33e   : > { %v1890_v6 = vpop.f32.mrb[6].mxu1 }
 0x33f   : > { %v1580_v42 = vadd.f32 %v1579_v19, %v1505_v18  ;;  %v3796_v58 = vpop.f32.mrb[7].mxu1 }
 0x340   : > { %v1656_v44 = vpop.f32.mrb[4].mxu0 }
 0x341   : > { %v3775_v21 = vpop.f32.mrb[5].mxu0  ;;  %v1657_v23 = vadd.f32 %v1656_v44, %v1580_v42 }
 0x342   : > { %v2041_v2 = vpop.f32.mrb[8].mxu1 }
 0x343   : > { %v1730_v29 = vadd.f32 %v1729_v54, %v1657_v23  ;;  %v3810_v14 = vpop.f32.mrb[9].mxu1  ;;  %v3323_v54 = vld [vmem:[%s5079_s8] ss:$0 sm:$0xff] }
 0x344   : > { %v1809_v46 = vpop.f32.mrb[6].mxu0 }
 0x345   : > { %v3789_v51 = vpop.f32.mrb[7].mxu0  ;;  %v1810_v52 = vadd.f32 %v1809_v46, %v1730_v29 }
 0x346   : > { %v2191_v62 = vpop.f32.mrb[10].mxu1 }
 0x347   : > { %v1891_v8 = vadd.f32 %v1890_v6, %v1810_v52  ;;  %v3824_v11 = vpop.f32.mrb[11].mxu1 }
 0x348   : > { %v1966_v59 = vpop.f32.mrb[8].mxu0 }
 0x349   : > { %v3803_v9 = vpop.f32.mrb[9].mxu0  ;;  %v1967_v37 = vadd.f32 %v1966_v59, %v1891_v8 }
 0x34b   : > { %v2042_v3 = vadd.f32 %v2041_v2, %v1967_v37  ;;  %v3324_v37 = vld [vmem:[%s5081_s10] ss:$0 sm:$0xff] }
 0x34c   : > { %v2118_v16 = vpop.f32.mrb[10].mxu0 }
 0x34d   : > { %v3817_v24 = vpop.f32.mrb[11].mxu0  ;;  %v2119_v26 = vadd.f32 %v2118_v16, %v2042_v3 }
 0x34f   : > { %v2192_v36 = vadd.f32 %v2191_v62, %v2119_v26 }
 0x351   : > { %v2202_v20 = vadd.f32 %v3322_v32, %v2192_v36 }
 0x353   : > { %v2203_v25 = vmax.f32 %v2202_v20, 0.0 }
 0x355   : > { %v2217_v30 = vsel %vm2215_vm3, %v2203_v25, 0 }
 0x356   : > { %v2288_v35 = vand.u32 4294901760, %v2217_v30 }
 0x358   : > { %v2289_v40 = vsub.f32 %v2217_v30, %v2288_v35 }
 0x35a   : > { %v2290_v45 = vand.u32 4294901760, %v2289_v40 }
 0x35c   : > { %v2291_v0 = vsub.f32 %v2289_v40, %v2290_v45 }
 0x35e   : > { %v2292_v4 = vand.u32 4294901760, %v2291_v0 }
 0x360   : > { %3834 = vmatmul.mubr.f32.vlgmr.msra.gmra.mrb[12].mxu0 %v2292_v4 }
 0x361   : > { %4193 = vmatpush3.bf16.msra.mxu0 %v4192_v13  ;;  %3844 = vmatprep.mubr.msk.f32.mxu0 %vm4398_vm2, %v4399_v41 }
 0x362   : > { %4194 = vmatprep.subr.bf16.mxu0 %v4397_v22 }
 0x365   : > { %4196 = vmatpush3.bf16.msra.mxu0 %v4195_v48 }
 0x366   : > { %4197 = vmatprep.subr.bf16.mxu0 %v4397_v22 }
 0x368   : > { %3845 = vmatmul.mubr.f32.vlgmr.msra.gmra.mrb[12].mxu0 %v2288_v35 }
 0x369   : > { %4199 = vmatpush3.bf16.msra.mxu0 %v4198_v60  ;;  %3855 = vmatprep.mubr.msk.f32.mxu0 %vm4398_vm2, %v4399_v41  ;;  %v2814_v60 = vsub.f32 %v2707_v5, %v2726_v38 }
 0x36a   : > { %4200 = vmatprep.subr.bf16.mxu0 %v4397_v22 }
 0x36b   : > { %v2815_v34 = vand.u32 4294901760, %v2814_v60 }
 0x36d   : > { %4202 = vmatpush3.bf16.msra.mxu0 %v4201_v47  ;;  %v2816_v39 = vsub.f32 %v2814_v60, %v2815_v34 }
 0x36e   : > { %4203 = vmatprep.subr.bf16.mxu0 %v4397_v22 }
 0x36f   : > { %v2817_v18 = vand.u32 4294901760, %v2816_v39 }
 0x370   : > { %3856 = vmatmul.mubr.f32.vlgmr.msra.gmra.mrb[12].mxu0 %v2289_v40 }
 0x371   : > { %4205 = vmatpush3.bf16.msra.mxu0 %v4939_v7  ;;  %3866 = vmatprep.mubr.msk.f32.mxu0 %vm4398_vm2, %v4399_v41 }
 0x372   : > { %4206 = vmatprep.subr.bf16.mxu0 %v4397_v22 }
 0x375   : > { %4208 = vmatpush3.bf16.msra.mxu0 %v4955_v55 }
 0x376   : > { %4209 = vmatprep.subr.bf16.mxu0 %v4397_v22 }
 0x378   : > { %3867 = vmatmul.mubr.f32.vlgmr.msra.gmra.mrb[12].mxu0 %v2290_v45 }
 0x379   : > { %4211 = vmatpush3.bf16.msra.mxu0 %v4973_v49  ;;  %3877 = vmatprep.mubr.msk.f32.mxu0 %vm4398_vm2, %v4399_v41 }
 0x37a   : > { %4212 = vmatprep.subr.bf16.mxu0 %v4397_v22 }
 0x37d   : > { %4214 = vmatpush3.bf16.msra.mxu0 %v4975_v61  ;;  %v2809_v61 = vsub.f32 %v2807_v31, %v2808_v27 }
 0x37e   : > { %4215 = vmatprep.subr.bf16.mxu0 %v4397_v22 }
 0x37f   : > { %v2810_v1 = vand.u32 4294901760, %v2809_v61 }
 0x380   : > { %3878 = vmatmul.mubr.f32.vlgmr.msra.gmra.mrb[12].mxu0 %v2288_v35 }
 0x381   : > { %4217 = vmatpush3.bf16.msra.mxu0 %v4939_v7  ;;  %3888 = vmatprep.mubr.msk.f32.mxu0 %vm4398_vm2, %v4399_v41  ;;  %v2800_v7 = vsub.f32 %v2705_v50, %v2720_v15 }
 0x382   : > { %4218 = vmatprep.subr.bf16.mxu0 %v4397_v22 }
 0x383   : > { %v2801_v53 = vand.u32 4294901760, %v2800_v7  ;;  %v4234_v43 = vpack.c.bf16 %v2807_v31, %v2800_v7 }
 0x385   : > { %4220 = vmatpush3.bf16.msra.mxu0 %v4955_v55  ;;  %v2708_v55 = vld [vmem:[%s5080_s9 + $0x18] sm:$0xff]  ;;  %v2802_v49 = vsub.f32 %v2800_v7, %v2801_v53  ;;  %v4246_v21 = vpack.c.bf16 %v2808_v27, %v2801_v53 }
 0x386   : > { %v2729_v13 = vand.u32 4294901760, %v2708_v55 }
 0x387   : > { %v2803_v33 = vand.u32 4294901760, %v2802_v49 }
 0x388   : > { %3889 = vmatmul.mubr.f32.vlgmr.msra.gmra.mrb[12].mxu0 %v2288_v35  ;;  %v4225_v48 = vpack.c.bf16 %v2729_v13, %v2726_v38  ;;  %v2821_v47 = vsub.f32 %v2708_v55, %v2729_v13 }
 0x389   : > { %v4228_v17 = vpack.c.bf16 %v2810_v1, %v2803_v33 }
 0x38a   : > { %4226 = vmatpush3.bf16.msra.mxu1 %v4225_v48  ;;  %v2822_v63 = vand.u32 4294901760, %v2821_v47  ;;  %v4237_v44 = vpack.c.bf16 %v2821_v47, %v2814_v60 }
 0x38b   : > { %4227 = vmatprep.subr.bf16.mxu1 %v4397_v22 }
 0x38c   : > { %v2823_v12 = vsub.f32 %v2821_v47, %v2822_v63  ;;  %v4249_v23 = vpack.c.bf16 %v2822_v63, %v2815_v34 }
 0x38e   : > { %v2824_v19 = vand.u32 4294901760, %v2823_v12 }
 0x390   : > { %v4231_v42 = vpack.c.bf16 %v2824_v19, %v2817_v18 }
 0x45b   : > { %v2700_v29 = vpop.f32.mrb[12].mxu0 }
 0x45c   : > { %v4267_v56 = vadd.f32 %v3323_v54, %v2700_v29  ;;  %v3890_v46 = vpop.f32.mrb[13].mxu0 }
 0x45e   : > { %v2704_v51 = vmax.f32 %v4267_v56, 0.0 }
 0x460   : > { %v2717_v52 = vsel %vm2215_vm3, %v2704_v51, 0 }
 0x461   : > { %v2788_v6 = vand.u32 4294901760, %v2717_v52 }
 0x463   : > { %v2789_v8 = vsub.f32 %v2717_v52, %v2788_v6 }
 0x465   : > { %v2790_v58 = vand.u32 4294901760, %v2789_v8 }
 0x467   : > { %v2791_v59 = vsub.f32 %v2789_v8, %v2790_v58 }
 0x469   : > { %v2792_v9 = vand.u32 4294901760, %v2791_v59 }
 0x46b   : > { %3900 = vmatmul.mubr.f32.vlgmr.msra.gmra.mrb[12].mxu1 %v2792_v9 }
 0x46c   : > { %4229 = vmatpush3.bf16.msra.mxu1 %v4228_v17  ;;  %3910 = vmatprep.mubr.msk.f32.mxu1 %vm4398_vm2, %v4399_v41 }
 0x46d   : > { %4230 = vmatprep.subr.bf16.mxu1 %v4397_v22 }
 0x470   : > { %4232 = vmatpush3.bf16.msra.mxu1 %v4231_v42 }
 0x471   : > { %4233 = vmatprep.subr.bf16.mxu1 %v4397_v22 }
 0x473   : > { %3911 = vmatmul.mubr.f32.vlgmr.msra.gmra.mrb[12].mxu1 %v2788_v6 }
 0x474   : > { %4235 = vmatpush3.bf16.msra.mxu1 %v4234_v43  ;;  %3921 = vmatprep.mubr.msk.f32.mxu1 %vm4398_vm2, %v4399_v41 }
 0x475   : > { %4236 = vmatprep.subr.bf16.mxu1 %v4397_v22 }
 0x478   : > { %4238 = vmatpush3.bf16.msra.mxu1 %v4237_v44 }
 0x479   : > { %4239 = vmatprep.subr.bf16.mxu1 %v4397_v22 }
 0x47b   : > { %3922 = vmatmul.mubr.f32.vlgmr.msra.gmra.mrb[12].mxu1 %v2789_v8 }
 0x47c   : > { %4241 = vmatpush3.bf16.msra.mxu1 %v5012_v57  ;;  %3932 = vmatprep.mubr.msk.f32.mxu1 %vm4398_vm2, %v4399_v41 }
 0x47d   : > { %4242 = vmatprep.subr.bf16.mxu1 %v4397_v22 }
 0x480   : > { %4244 = vmatpush3.bf16.msra.mxu1 %v4225_v48 }
 0x481   : > { %4245 = vmatprep.subr.bf16.mxu1 %v4397_v22 }
 0x483   : > { %3933 = vmatmul.mubr.f32.vlgmr.msra.gmra.mrb[12].mxu1 %v2790_v58 }
 0x484   : > { %4247 = vmatpush3.bf16.msra.mxu1 %v4246_v21  ;;  %3943 = vmatprep.mubr.msk.f32.mxu1 %vm4398_vm2, %v4399_v41 }
 0x485   : > { %4248 = vmatprep.subr.bf16.mxu1 %v4397_v22 }
 0x488   : > { %4250 = vmatpush3.bf16.msra.mxu1 %v4249_v23 }
 0x489   : > { %4251 = vmatprep.subr.bf16.mxu1 %v4397_v22 }
 0x48b   : > { %3944 = vmatmul.mubr.f32.vlgmr.msra.gmra.mrb[12].mxu1 %v2788_v6 }
 0x48c   : > { %4253 = vmatpush3.bf16.msra.mxu1 %v5012_v57  ;;  %3954 = vmatprep.mubr.msk.f32.mxu1 %vm4398_vm2, %v4399_v41 }
 0x48d   : > { %4254 = vmatprep.subr.bf16.mxu1 %v4397_v22 }
 0x490   : > { %4256 = vmatpush3.bf16.msra.mxu1 %v4225_v48 }
 0x493   : > { %3955 = vmatmul.mubr.f32.vlgmr.msra.gmra.mrb[12].mxu1 %v2788_v6 }
 0x566   : > { %v3200_v2 = vpop.f32.mrb[12].mxu1 }
 0x567   : > { %v4268_v3 = vadd.f32 %v3324_v37, %v3200_v2  ;;  %v3956_v14 = vpop.f32.mrb[13].mxu1 }
 0x569   : > { %3205 = vst.msk [vmem:[%s449_s27] sm:$0xff] %vm3204_vm4, %v4268_v3 }
 0x56a PF: > { %s21_s21 = sadd.s32 1, %s4389_s21   ;;  %s5087_s29 = sld [smem:[#allocation3_spill]] }
 0x56b   : > { %p18_p10 = scmp.ge.s32.totalorder %s21_s21, 10   ;;  %s5088_s12 = sld [smem:[#allocation4_spill]] }
 0x56c   : > { %s5089_s17 = smov %s4381_s19  ;;  %s5090_s18 = smov %s4385_s20 }
 0x56d   :  { %20 = sbr.rel (!%p18_p10) target bundleno = 3 (0x3), region = 111 }
 0x570   : > { %s5091_s19 = smov %s5087_s29 }
 0x571   : > { %s5092_s20 = smov %s5088_s12 }

</bundles_post_ra>
